<compile_context>
chip_gen: v5e
topology: v5e:2x2
jax: 0.10.0
libtpu: 0.0.40
codegen_flags: <defaults>
</compile_context>

<pallas_src>
import jax
import jax.numpy as jnp
from jax.experimental import pallas as pl
from jax.experimental.pallas import tpu as pltpu

NUM_CLASSES = 7
FEAT_CHANNELS = 576      # mobilenet_v3_small: backbone.classifier[0].in_features
LANE = 128               # TPU lane width
SUBLANE = 8              # pool-chunk granularity (f32 sublane count)


def head_kernel(x_ref, w_ref, b_ref, o_ref):
    """Fused AdaptiveAvgPool2d(1) + flatten + (eval) dropout + Linear.

    x_ref: (n_tile, HW, C)  channels-last feature tile (C on lanes)
    w_ref: (C, KP)          classifier weight with 1/(H*W) pre-folded, lane-padded
    b_ref: (1, KP)          classifier bias (padded)
    o_ref: (n_tile, KP)     padded logits
    """
    n_tile, hw, c = x_ref.shape

    # --- AdaptiveAvgPool2d(1): spatial sum with f32 accumulation, 8 sublanes
    # at a time, so no (n_tile, HW, C) f32 temporary is ever materialized.
    pooled = jnp.zeros((n_tile, c), jnp.float32)
    n_full = hw // SUBLANE
    rem = hw - n_full * SUBLANE
    for s in range(n_full):                       # static, short unroll (HW/8)
        chunk = x_ref[:, s * SUBLANE:(s + 1) * SUBLANE, :]
        pooled = pooled + jnp.sum(chunk.astype(jnp.float32), axis=1)
    if rem:                                       # static tail (e.g. HW=49)
        tail = x_ref[:, n_full * SUBLANE:hw, :]
        pooled = pooled + jnp.sum(tail.astype(jnp.float32), axis=1)

    # --- flatten(1) is the (n_tile, C) layout itself; nn.Dropout(0.5) is the
    # identity at inference time.
    # TODO(synk): training-mode stochastic dropout not implemented (would use
    # pltpu.prng_seed + pltpu.prng_random_bits to build the mask).

    # --- Linear: 1/(H*W) already folded into w_ref; bias added after the dot.
    logits = jnp.dot(pooled, w_ref[...], preferred_element_type=jnp.float32)
    o_ref[...] = (logits + b_ref[...]).astype(o_ref.dtype)


def _physical_vmem_bytes():
    """Per-TensorCore physical VMEM (v5e/v6e 128 MiB, v7x 64 MiB)."""
    default = 64 * 1024 * 1024            # conservative fallback: v7x per-TC
    try:
        info = pltpu.get_tpu_info()
        return int(getattr(info, "vmem_capacity_bytes", default))
    except Exception:
        return default


def _choose_tiling(N, HW, C, x_itemsize):
    """Pick (n_tile, vmem_limit_bytes) for the current TPU generation."""
    vmem_cap = _physical_vmem_bytes()
    # Use ~3/4 of physical VMEM and pass it explicitly (v5e defaults to a
    # 16 MiB scoped limit, v6e/v7x to 32 MiB). Clamp for safety.
    vmem_limit = min((3 * vmem_cap) // 4, 96 * 1024 * 1024)
    # The 2x double-buffered x block gets ~2/3 of the limit; the rest covers
    # the VMEM-resident weights/bias, the (tiny) double-buffered output block,
    # the f32 pool accumulator and per-chunk temporaries.
    row_bytes = HW * C * x_itemsize
    per_buf = vmem_limit // 3
    n_tile = max(SUBLANE, (per_buf // row_bytes // SUBLANE) * SUBLANE)
    if n_tile >= N:
        if N > SUBLANE:
            # Guarantee >= 2 grid steps so both v7x TensorCores get work.
            half = -(-N // 2)
            n_tile = ((half + SUBLANE - 1) // SUBLANE) * SUBLANE
        else:
            n_tile = N        # block dim == full array dim (small-batch case)
    return n_tile, vmem_limit


def emotion_net_head(feat_nhwc, w, b, *, n_tile=None):
    """feat_nhwc: (N, H, W, C) channels-last feature map (backbone's native
    dtype, e.g. bf16); w: (C, K); b: (K,). Returns logits (N, K) in f32.

    (If coming from torch NCHW, transpose outside; on TPU the backbone should
    emit channels-last so the reshape below is free.)
    """
    N, H, W, C = feat_nhwc.shape
    K = w.shape[1]
    HW = H * W
    x = feat_nhwc.reshape(N, HW, C)               # free reshape, no transpose

    # Pad class dim to one lane width (KP=128) -> unmasked stores; fold the
    # 1/(H*W) avg-pool scale into the tiny classifier weight.
    KP = ((K + LANE - 1) // LANE) * LANE
    inv_hw = 1.0 / float(HW)
    w_p = jnp.zeros((C, KP), jnp.float32).at[:, :K].set(
        w.astype(jnp.float32) * inv_hw)
    b_p = jnp.zeros((1, KP), jnp.float32).at[0, :K].set(b.astype(jnp.float32))

    auto_tile, vmem_limit = _choose_tiling(N, HW, C, x.dtype.itemsize)
    if n_tile is None:
        n_tile = auto_tile
    else:
        n_tile = N if n_tile >= N else max(SUBLANE, (n_tile // SUBLANE) * SUBLANE)
    grid = (pl.cdiv(N, n_tile),)

    cost = pl.CostEstimate(
        flops=2 * N * C * KP + N * HW * C,
        transcendentals=0,
        bytes_accessed=(x.size * x.dtype.itemsize
                        + w_p.size * 4 + b_p.size * 4 + N * KP * 4),
    )

    out = pl.pallas_call(
        head_kernel,
        out_shape=jax.ShapeDtypeStruct((N, KP), jnp.float32),
        grid=grid,
        in_specs=[
            pl.BlockSpec((n_tile, HW, C), lambda i: (i, 0, 0)),
            pl.BlockSpec((C, KP), lambda i: (0, 0)),  # constant -> VMEM-resident
            pl.BlockSpec((1, KP), lambda i: (0, 0)),
        ],
        out_specs=pl.BlockSpec((n_tile, KP), lambda i: (i, 0)),
        compiler_params=pltpu.CompilerParams(
            dimension_semantics=("parallel",),   # shards batch across v7x's 2 TCs
            vmem_limit_bytes=int(vmem_limit),
        ),
        cost_estimate=cost,
    )(x, w_p, b_p)
    return out[:, :K]


if __name__ == "__main__":
    key = jax.random.PRNGKey(0)
    k_x, k_w, k_b = jax.random.split(key, 3)

    # Small demo shapes: batch=2, 4x4 spatial, 576 channels, channels-last.
    N, H, W, C = 2, 4, 4, FEAT_CHANNELS
    # Stream the backbone's native bf16 activations (halves HBM traffic).
    feat = jax.random.normal(k_x, (N, H, W, C), dtype=jnp.float32).astype(jnp.bfloat16)

    # torch nn.Linear-style init U(-1/sqrt(C), 1/sqrt(C)); weight stored (C, K).
    bound = float(1.0 / (C ** 0.5))
    w = jax.random.uniform(k_w, (C, NUM_CLASSES), minval=-bound, maxval=bound,
                           dtype=jnp.float32)
    b = jax.random.uniform(k_b, (NUM_CLASSES,), minval=-bound, maxval=bound,
                           dtype=jnp.float32)

    out = emotion_net_head(feat, w, b)
    out = jax.block_until_ready(out)

    # Pure-JAX reference of the same head on the same bf16 feature map.
    ref = feat.astype(jnp.float32).mean(axis=(1, 2)) @ w + b
    assert out.shape == (N, NUM_CLASSES)
    assert jnp.allclose(out, ref, atol=1e-3, rtol=1e-3), "kernel mismatch vs reference"

    # Tiny extra check exercising the multi-tile / partial-last-tile path.
    N2 = 20
    feat2 = jax.random.normal(jax.random.PRNGKey(1), (N2, H, W, C),
                              dtype=jnp.float32).astype(jnp.bfloat16)
    out2 = jax.block_until_ready(emotion_net_head(feat2, w, b, n_tile=8))
    ref2 = feat2.astype(jnp.float32).mean(axis=(1, 2)) @ w + b
    assert jnp.allclose(out2, ref2, atol=1e-3, rtol=1e-3), "multi-tile mismatch"

    print("KERNEL_OK")
</pallas_src>

<mosaic_0001>
module attributes {stable_mosaic.version = 11 : i64} {
  func.func @head_kernel(%arg0: i32, %arg1: memref<2x16x576xbf16, #tpu.memory_space<vmem>>, %arg2: memref<576x128xf32, #tpu.memory_space<vmem>>, %arg3: memref<1x128xf32, #tpu.memory_space<vmem>>, %arg4: memref<2x128xf32, #tpu.memory_space<vmem>>) attributes {dimension_semantics = [#tpu.dimension_semantics<parallel>], iteration_bounds = array<i64: 1>, scalar_prefetch = 0 : i64, scratch_operands = 0 : i64, tpu.core_type = #tpu.core_type<tc>, window_params = [{transform_indices = @transform_0, window_bounds = array<i64: 2, 16, 576>}, {pipeline_mode = #tpu.pipeline_mode<synchronous>, transform_indices = @transform_1, window_bounds = array<i64: 576, 128>}, {pipeline_mode = #tpu.pipeline_mode<synchronous>, transform_indices = @transform_2, window_bounds = array<i64: 1, 128>}, {transform_indices = @transform_3, window_bounds = array<i64: 2, 128>}]} {
    %cst = arith.constant 0.000000e+00 : f32
    %0 = vector.broadcast %cst : f32 to vector<2x576xf32>
    %c0 = arith.constant 0 : index
    %c0_0 = arith.constant 0 : index
    %c0_1 = arith.constant 0 : index
    %1 = vector.load %arg1[%c0, %c0_0, %c0_1] : memref<2x16x576xbf16, #tpu.memory_space<vmem>>, vector<2x8x576xbf16>
    %2 = arith.extf %1 : vector<2x8x576xbf16> to vector<2x8x576xf32>
    %cst_2 = arith.constant dense<0.000000e+00> : vector<2x576xf32>
    %3 = vector.multi_reduction <add>, %2, %cst_2 [1] : vector<2x8x576xf32> to vector<2x576xf32>
    %4 = arith.addf %0, %3 : vector<2x576xf32>
    %c0_3 = arith.constant 0 : index
    %c8 = arith.constant 8 : index
    %c0_4 = arith.constant 0 : index
    %5 = vector.load %arg1[%c0_3, %c8, %c0_4] : memref<2x16x576xbf16, #tpu.memory_space<vmem>>, vector<2x8x576xbf16>
    %6 = arith.extf %5 : vector<2x8x576xbf16> to vector<2x8x576xf32>
    %cst_5 = arith.constant dense<0.000000e+00> : vector<2x576xf32>
    %7 = vector.multi_reduction <add>, %6, %cst_5 [1] : vector<2x8x576xf32> to vector<2x576xf32>
    %8 = arith.addf %4, %7 : vector<2x576xf32>
    %c0_6 = arith.constant 0 : index
    %c0_7 = arith.constant 0 : index
    %9 = vector.load %arg2[%c0_6, %c0_7] : memref<576x128xf32, #tpu.memory_space<vmem>>, vector<576x128xf32>
    %cst_8 = arith.constant dense<0.000000e+00> : vector<2x128xf32>
    %10 = tpu.matmul %8, %9, %cst_8 {dimension_numbers = #tpu.dot_dimension_numbers<[1], [0], [0], [1], [0, 0, 1, 1], [], []>} : vector<2x576xf32>, vector<576x128xf32>, vector<2x128xf32> -> vector<2x128xf32>
    %c0_9 = arith.constant 0 : index
    %c0_10 = arith.constant 0 : index
    %11 = vector.load %arg3[%c0_9, %c0_10] : memref<1x128xf32, #tpu.memory_space<vmem>>, vector<1x128xf32>
    %12 = vector.broadcast %11 : vector<1x128xf32> to vector<2x128xf32>
    %13 = arith.addf %10, %12 : vector<2x128xf32>
    %c0_11 = arith.constant 0 : index
    %c0_12 = arith.constant 0 : index
    %14 = vector.load %arg4[%c0_11, %c0_12] : memref<2x128xf32, #tpu.memory_space<vmem>>, vector<2x128xf32>
    tpu.vector_store %arg4[%c0_11, %c0_12], %13 {strides = array<i32>} : memref<2x128xf32, #tpu.memory_space<vmem>>, vector<2x128xf32>,
    return
  }
  func.func @transform_0(%arg0: i32) -> (i32, i32, i32) {
    %c0_i32 = arith.constant 0 : i32
    %c0_i32_0 = arith.constant 0 : i32
    %c0_i32_1 = arith.constant 0 : i32
    return %arg0, %c0_i32, %c0_i32_0 : i32, i32, i32
  }
  func.func @transform_1(%arg0: i32) -> (i32, i32) {
    %c0_i32 = arith.constant 0 : i32
    %c0_i32_0 = arith.constant 0 : i32
    %c0_i32_1 = arith.constant 0 : i32
    return %c0_i32, %c0_i32_0 : i32, i32
  }
  func.func @transform_2(%arg0: i32) -> (i32, i32) {
    %c0_i32 = arith.constant 0 : i32
    %c0_i32_0 = arith.constant 0 : i32
    %c0_i32_1 = arith.constant 0 : i32
    return %c0_i32, %c0_i32_0 : i32, i32
  }
  func.func @transform_3(%arg0: i32) -> (i32, i32) {
    %c0_i32 = arith.constant 0 : i32
    %c0_i32_0 = arith.constant 0 : i32
    return %arg0, %c0_i32 : i32, i32
  }
}

</mosaic_0001>

<bundles_post_ra>
// kernel: tpu_custom_call.1
= control target key start
LH: loop header
LB: loop body
LE: loop exit
PB: predicated region body
PF: predicated region fallthrough
CT: control target
= control target key end

     0   :  { %8 = vsyncpa [#allocation3], 0  ;;  %s628_s0 = inlined_call_operand.hbm [shape: bf16[2,16,576], index: 0, kind: input, shape index: {}]   ;;  %s629_s1 = inlined_call_operand.hbm [shape: f32[576,128], index: 1, kind: input, shape index: {}]   ;;  %s630_s2 = inlined_call_operand.vmem [shape: f32[1,128], index: 2, kind: input, shape index: {}]   ;;  %s631_s3 = inlined_call_operand.hbm [shape: f32[2,128], index: 3, kind: output, shape index: {}]  }
   0x1   :  { %9 = vsyncpa [#allocation6], 0 }
   0x2   :  { %10 = vsyncpa [#allocation4], 0  ;;  %s15_s14 = sshll.u32 %s628_s0, 4  ;;  %s528_s15 = smov [#allocation2]   ;;  %s16_s14 = int_to_ptr.hbm [resolvable:$true] %s15_s14 }
   0x3   :  { %s17_s16 = sshll.u32 %s528_s15, 4  ;;  %s28_s19 = sshll.u32 %s629_s1, 4  ;;  %s18_s16 = int_to_ptr.vmem [resolvable:$true] %s17_s16  ;;  %s29_s19 = int_to_ptr.hbm [resolvable:$true] %s28_s19 }
   0x4   :  { %s529_s20 = smov 320   ;;  %s530_s21 = smov 20  }
   0x5   :  { %23 = dma.hbm_to_vmem [thread:$0]  %s16_s14, 1280, %s18_s16, [#allocation3], %s529_s20, %s529_s20, %s530_s21  }
   0x6   :  { %s531_s22 = smov [#allocation5]   ;;  %s532_s24 = smov 128  }
   0x7   :  { %s30_s23 = sshll.u32 %s531_s22, 4  ;;  %s533_s25 = smov 8   ;;  %s31_s23 = int_to_ptr.vmem [resolvable:$true] %s30_s23 }
   0x8   :  { %36 = dma.hbm_to_vmem [thread:$0]  %s29_s19, 9216, %s31_s23, [#allocation6], %s532_s24, %s532_s24, %s533_s25  }
   0x9   :  { %522 = dma.done.wait [#allocation3], 1280  }
   0xa   :  { %523 = vsyncadd [#allocation3], 4294966016 }
   0xb   :  { %524 = dma.done.wait [#allocation6], 9216  }
   0xc   :  { %525 = vsyncadd [#allocation6], 4294958080  ;;  %v239_v0 = vld [vmem:[#allocation5 + $0x78] sm:$0xff]  ;;  %v238_v1 = vld [vmem:[#allocation5 + $0x70] sm:$0xff]  ;;  %vm310_vm0 = vcmask 1041409   ;;  %vm87_vm1 = vcmask 523264  }
   0xd   :  { %322 = vmatpush.msra.mxu0 %v239_v0  ;;  %v271_v2 = vld [vmem:[#allocation5 + $0x178] sm:$0xff]  ;;  %v270_v3 = vld [vmem:[#allocation5 + $0x170] sm:$0xff]  ;;  %v237_v4 = vld [vmem:[#allocation5 + $0x68] sm:$0xff]  ;;  %s534_s26 = smov [#allocation7]   ;;  %s430_s30 = sshll.u32 %s631_s3, 4  ;;  %s431_s30 = int_to_ptr.hbm [resolvable:$true] %s430_s30 }
   0xe   :  { %362 = vmatpush.msra.mxu2 %v271_v2  ;;  %v287_v5 = vld [vmem:[#allocation5 + $0x1f8] sm:$0xff]  ;;  %v269_v7 = vld [vmem:[#allocation5 + $0x168] sm:$0xff]  ;;  %v286_v8 = vld [vmem:[#allocation5 + $0x1f0] sm:$0xff]  ;;  %s428_s27 = sshll.u32 %s534_s26, 4  ;;  %s429_s27 = int_to_ptr.vmem [resolvable:$true] %s428_s27 }
   0xf   :  { %v255_v6 = vld [vmem:[#allocation5 + $0xf8] sm:$0xff]  ;;  %323 = vmatpush.msra.mxu0 %v238_v1  ;;  %382 = vmatpush.msra.mxu3 %v287_v5  ;;  %v236_v9 = vld [vmem:[#allocation5 + $0x60] sm:$0xff]  ;;  %v254_v10 = vld [vmem:[#allocation5 + $0xf0] sm:$0xff] }
  0x10   :  { %363 = vmatpush.msra.mxu2 %v270_v3  ;;  %342 = vmatpush.msra.mxu1 %v255_v6  ;;  %v285_v11 = vld [vmem:[#allocation5 + $0x1e8] sm:$0xff]  ;;  %v268_v12 = vld [vmem:[#allocation5 + $0x160] sm:$0xff]  ;;  %v235_v14 = vld [vmem:[#allocation5 + $0x58] sm:$0xff] }
  0x11   :  { %324 = vmatpush.msra.mxu0 %v237_v4  ;;  %383 = vmatpush.msra.mxu3 %v286_v8  ;;  %v253_v13 = vld [vmem:[#allocation5 + $0xe8] sm:$0xff]  ;;  %v284_v15 = vld [vmem:[#allocation5 + $0x1e0] sm:$0xff]  ;;  %v267_v16 = vld [vmem:[#allocation5 + $0x158] sm:$0xff] }
  0x12   :  { %364 = vmatpush.msra.mxu2 %v269_v7  ;;  %343 = vmatpush.msra.mxu1 %v254_v10  ;;  %v252_v17 = vld [vmem:[#allocation5 + $0xe0] sm:$0xff]  ;;  %v234_v18 = vld [vmem:[#allocation5 + $0x50] sm:$0xff]  ;;  %v283_v19 = vld [vmem:[#allocation5 + $0x1d8] sm:$0xff] }
  0x13   :  { %325 = vmatpush.msra.mxu0 %v236_v9  ;;  %384 = vmatpush.msra.mxu3 %v285_v11  ;;  %v266_v20 = vld [vmem:[#allocation5 + $0x150] sm:$0xff]  ;;  %v251_v21 = vld [vmem:[#allocation5 + $0xd8] sm:$0xff]  ;;  %v233_v22 = vld [vmem:[#allocation5 + $0x48] sm:$0xff] }
  0x14   :  { %365 = vmatpush.msra.mxu2 %v268_v12  ;;  %344 = vmatpush.msra.mxu1 %v253_v13  ;;  %v282_v23 = vld [vmem:[#allocation5 + $0x1d0] sm:$0xff]  ;;  %v265_v24 = vld [vmem:[#allocation5 + $0x148] sm:$0xff]  ;;  %v232_v26 = vld [vmem:[#allocation5 + $0x40] sm:$0xff] }
  0x15   :  { %326 = vmatpush.msra.mxu0 %v235_v14  ;;  %385 = vmatpush.msra.mxu3 %v284_v15  ;;  %v250_v25 = vld [vmem:[#allocation5 + $0xd0] sm:$0xff]  ;;  %v281_v27 = vld [vmem:[#allocation5 + $0x1c8] sm:$0xff]  ;;  %v264_v28 = vld [vmem:[#allocation5 + $0x140] sm:$0xff] }
  0x16   :  { %366 = vmatpush.msra.mxu2 %v267_v16  ;;  %345 = vmatpush.msra.mxu1 %v252_v17  ;;  %v249_v29 = vld [vmem:[#allocation5 + $0xc8] sm:$0xff]  ;;  %v231_v30 = vld [vmem:[#allocation5 + $0x38] sm:$0xff]  ;;  %v280_v31 = vld [vmem:[#allocation5 + $0x1c0] sm:$0xff] }
  0x17   :  { %327 = vmatpush.msra.mxu0 %v234_v18  ;;  %386 = vmatpush.msra.mxu3 %v283_v19  ;;  %v263_v32 = vld [vmem:[#allocation5 + $0x138] sm:$0xff]  ;;  %v248_v33 = vld [vmem:[#allocation5 + $0xc0] sm:$0xff]  ;;  %v230_v34 = vld [vmem:[#allocation5 + $0x30] sm:$0xff] }
  0x18   :  { %367 = vmatpush.msra.mxu2 %v266_v20  ;;  %346 = vmatpush.msra.mxu1 %v251_v21  ;;  %v279_v35 = vld [vmem:[#allocation5 + $0x1b8] sm:$0xff]  ;;  %v262_v36 = vld [vmem:[#allocation5 + $0x130] sm:$0xff]  ;;  %v229_v38 = vld [vmem:[#allocation5 + $0x28] sm:$0xff] }
  0x19   :  { %328 = vmatpush.msra.mxu0 %v233_v22  ;;  %387 = vmatpush.msra.mxu3 %v282_v23  ;;  %v247_v37 = vld [vmem:[#allocation5 + $0xb8] sm:$0xff]  ;;  %v278_v39 = vld [vmem:[#allocation5 + $0x1b0] sm:$0xff]  ;;  %v228_v40 = vld [vmem:[#allocation5 + $0x20] sm:$0xff] }
  0x1a   :  { %368 = vmatpush.msra.mxu2 %v265_v24  ;;  %347 = vmatpush.msra.mxu1 %v250_v25  ;;  %v261_v41 = vld [vmem:[#allocation5 + $0x128] sm:$0xff]  ;;  %v246_v42 = vld [vmem:[#allocation5 + $0xb0] sm:$0xff]  ;;  %v227_v43 = vld [vmem:[#allocation5 + $0x18] sm:$0xff] }
  0x1b   :  { %329 = vmatpush.msra.mxu0 %v232_v26  ;;  %388 = vmatpush.msra.mxu3 %v281_v27  ;;  %v260_v44 = vld [vmem:[#allocation5 + $0x120] sm:$0xff]  ;;  %v277_v45 = vld [vmem:[#allocation5 + $0x1a8] sm:$0xff]  ;;  %v259_v47 = vld [vmem:[#allocation5 + $0x118] sm:$0xff] }
  0x1c   :  { %369 = vmatpush.msra.mxu2 %v264_v28  ;;  %348 = vmatpush.msra.mxu1 %v249_v29  ;;  %v245_v46 = vld [vmem:[#allocation5 + $0xa8] sm:$0xff]  ;;  %v561_v48 = vld [vmem:[#allocation2 + $0x8] sm:$0xff]  ;;  %v563_v49 = vld [vmem:[#allocation2 + $0x30] sm:$0xff] }
  0x1d   :  { %330 = vmatpush.msra.mxu0 %v231_v30  ;;  %389 = vmatpush.msra.mxu3 %v280_v31  ;;  %v226_v50 = vld [vmem:[#allocation5 + $0x10] sm:$0xff]  ;;  %v276_v51 = vld [vmem:[#allocation5 + $0x1a0] sm:$0xff]  ;;  %v55_v52 = vunpack.c.l.bf16 %v561_v48  ;;  %v60_v53 = vunpack.c.l.bf16 %v563_v49  ;;  %v56_v56 = vunpack.c.h.bf16 %v561_v48  ;;  %v61_v57 = vunpack.c.h.bf16 %v563_v49  ;;  %v275_v59 = vld [vmem:[#allocation5 + $0x198] sm:$0xff] }
  0x1e   :  { %370 = vmatpush.msra.mxu2 %v263_v32  ;;  %349 = vmatpush.msra.mxu1 %v248_v33  ;;  %v567_v54 = vld [vmem:[#allocation2 + $0x1c] sm:$0xff]  ;;  %v569_v55 = vld [vmem:[#allocation2 + $0x44] sm:$0xff]  ;;  %v244_v58 = vld [vmem:[#allocation5 + $0xa0] sm:$0xff] }
  0x1f   :  { %331 = vmatpush.msra.mxu0 %v230_v34  ;;  %390 = vmatpush.msra.mxu3 %v279_v35  ;;  %v144_v60 = vunpack.c.l.bf16 %v567_v54  ;;  %v149_v61 = vunpack.c.l.bf16 %v569_v55  ;;  %v575_v62 = vld [vmem:[#allocation2] sm:$0xff]  ;;  %v145_v63 = vunpack.c.h.bf16 %v567_v54  ;;  %v150_v0 = vunpack.c.h.bf16 %v569_v55  ;;  %v579_v3 = vld [vmem:[#allocation2 + $0x28] sm:$0xff]  ;;  %v582_v5 = vld [vmem:[#allocation2 + $0x14] sm:$0xff] }
  0x20   :  { %371 = vmatpush.msra.mxu2 %v262_v36  ;;  %350 = vmatpush.msra.mxu1 %v247_v37  ;;  %v75_v1 = vrot.slane %v55_v52, 4  ;;  %v107_v2 = vrot.slane %v60_v53, 4  ;;  %v53_v4 = vunpack.c.l.bf16 %v575_v62  ;;  %v584_v6 = vld [vmem:[#allocation2 + $0x3c] sm:$0xff]  ;;  %v588_v7 = vrot.slane %v56_v56, 4  ;;  %v243_v9 = vld [vmem:[#allocation5 + $0x98] sm:$0xff]  ;;  %v224_v26 = vld [vmem:[#allocation5] sm:$0xff] }
  0x21   :  { %332 = vmatpush.msra.mxu0 %v229_v38  ;;  %391 = vmatpush.msra.mxu3 %v278_v39  ;;  %v258_v8 = vld [vmem:[#allocation5 + $0x110] sm:$0xff]  ;;  %v164_v10 = vrot.slane %v144_v60, 4  ;;  %v195_v11 = vrot.slane %v149_v61, 4  ;;  %v58_v12 = vunpack.c.l.bf16 %v579_v3  ;;  %v142_v13 = vunpack.c.l.bf16 %v582_v5  ;;  %v225_v14 = vld [vmem:[#allocation5 + $0x8] sm:$0xff]  ;;  %v295_v32 = vld [vmem:[#allocation5 + $0x238] sm:$0xff] }
  0x22   :  { %372 = vmatpush.msra.mxu2 %v261_v41  ;;  %351 = vmatpush.msra.mxu1 %v246_v42  ;;  %v274_v15 = vld [vmem:[#allocation5 + $0x190] sm:$0xff]  ;;  %v76_v16 = vadd.f32 %v75_v1, %v55_v52  ;;  %v108_v17 = vadd.f32 %v107_v2, %v60_v53  ;;  %v63_v18 = vrot.slane %v53_v4, 4  ;;  %v147_v19 = vunpack.c.l.bf16 %v584_v6  ;;  %v257_v20 = vld [vmem:[#allocation5 + $0x108] sm:$0xff]  ;;  %v256_v33 = vld [vmem:[#allocation5 + $0x100] sm:$0xff] }
  0x23   :  { %333 = vmatpush.msra.mxu0 %v228_v40  ;;  %392 = vmatpush.msra.mxu3 %v277_v45  ;;  %v242_v21 = vld [vmem:[#allocation5 + $0x90] sm:$0xff]  ;;  %v165_v22 = vadd.f32 %v164_v10, %v144_v60  ;;  %v196_v23 = vadd.f32 %v195_v11, %v149_v61  ;;  %v95_v24 = vrot.slane %v58_v12, 4  ;;  %v152_v25 = vrot.slane %v142_v13, 4  ;;  %v273_v27 = vld [vmem:[#allocation5 + $0x188] sm:$0xff]  ;;  %v272_v41 = vld [vmem:[#allocation5 + $0x180] sm:$0xff] }
  0x24   :  { %373 = vmatpush.msra.mxu2 %v260_v44  ;;  %352 = vmatpush.msra.mxu1 %v245_v46  ;;  %v77_v28 = vrot.slane %v76_v16, 2  ;;  %v109_v29 = vrot.slane %v108_v17, 2  ;;  %v64_v30 = vadd.f32 %v63_v18, %v53_v4  ;;  %v183_v31 = vrot.slane %v147_v19, 4  ;;  %v241_v40 = vld [vmem:[#allocation5 + $0x88] sm:$0xff]  ;;  %v294_v44 = vld [vmem:[#allocation5 + $0x230] sm:$0xff]  ;;  %v288_v55 = vld [vmem:[#allocation5 + $0x200] sm:$0xff] }
  0x25   :  { %334 = vmatpush.msra.mxu0 %v227_v43  ;;  %393 = vmatpush.msra.mxu3 %v276_v51  ;;  %v166_v34 = vrot.slane %v165_v22, 2  ;;  %v197_v35 = vrot.slane %v196_v23, 2  ;;  %v96_v36 = vadd.f32 %v95_v24, %v58_v12  ;;  %v153_v37 = vadd.f32 %v152_v25, %v142_v13  ;;  %v293_v60 = vld [vmem:[#allocation5 + $0x228] sm:$0xff]  ;;  %v291_v25 = vld [vmem:[#allocation5 + $0x218] sm:$0xff] }
  0x26   :  { %374 = vmatpush.msra.mxu2 %v259_v47  ;;  %353 = vmatpush.msra.mxu1 %v244_v58  ;;  %v78_v38 = vadd.f32 %v77_v28, %v76_v16  ;;  %v110_v39 = vadd.f32 %v109_v29, %v108_v17  ;;  %v65_v42 = vrot.slane %v64_v30, 2  ;;  %v184_v43 = vadd.f32 %v183_v31, %v147_v19  ;;  %v290_v31 = vld [vmem:[#allocation5 + $0x210] sm:$0xff] }
  0x27   :  { %335 = vmatpush.msra.mxu0 %v226_v50  ;;  %394 = vmatpush.msra.mxu3 %v275_v59  ;;  %v167_v45 = vadd.f32 %v166_v34, %v165_v22  ;;  %v198_v46 = vadd.f32 %v197_v35, %v196_v23  ;;  %v97_v47 = vrot.slane %v96_v36, 2  ;;  %v154_v50 = vrot.slane %v153_v37, 2  ;;  %v240_v59 = vld [vmem:[#allocation5 + $0x80] sm:$0xff] }
  0x28   :  { %375 = vmatpush.msra.mxu2 %v258_v8  ;;  %354 = vmatpush.msra.mxu1 %v243_v9  ;;  %v79_v51 = vrot.slane %v78_v38, 1  ;;  %v111_v52 = vrot.slane %v110_v39, 1  ;;  %v66_v53 = vadd.f32 %v65_v42, %v64_v30  ;;  %v185_v58 = vrot.slane %v184_v43, 2 }
  0x29   :  { %336 = vmatpush.msra.mxu0 %v225_v14  ;;  %395 = vmatpush.msra.mxu3 %v274_v15  ;;  %v168_v61 = vrot.slane %v167_v45, 1  ;;  %v199_v1 = vrot.slane %v198_v46, 1  ;;  %v98_v2 = vadd.f32 %v97_v47, %v96_v36  ;;  %v155_v4 = vadd.f32 %v154_v50, %v153_v37  ;;  %v292_v14 = vld [vmem:[#allocation5 + $0x220] sm:$0xff] }
  0x2a   :  { %376 = vmatpush.msra.mxu2 %v257_v20  ;;  %355 = vmatpush.msra.mxu1 %v242_v21  ;;  %v80_v8 = vadd.f32 %v79_v51, %v78_v38  ;;  %v112_v9 = vadd.f32 %v111_v52, %v110_v39  ;;  %v67_v10 = vrot.slane %v66_v53, 1  ;;  %v186_v11 = vadd.f32 %v185_v58, %v184_v43  ;;  %v289_v38 = vld [vmem:[#allocation5 + $0x208] sm:$0xff] }
  0x2b   :  { %337 = vmatpush.msra.mxu0 %v224_v26  ;;  %396 = vmatpush.msra.mxu3 %v273_v27  ;;  %v169_v12 = vadd.f32 %v168_v61, %v167_v45  ;;  %v200_v13 = vadd.f32 %v199_v1, %v198_v46  ;;  %v99_v15 = vrot.slane %v98_v2, 1  ;;  %v156_v16 = vrot.slane %v155_v4, 1  ;;  %v52_v52 = vld [vmem:[#allocation2 + $0x38] sm:$0xf] }
  0x2c   :  { %377 = vmatpush.msra.mxu2 %v256_v33  ;;  %356 = vmatpush.msra.mxu1 %v241_v40  ;;  %v68_v17 = vadd.f32 %v67_v10, %v66_v53  ;;  %v187_v18 = vrot.slane %v186_v11, 1  ;;  %v82_v19 = vadd.f32 %v588_v7, %v56_v56  ;;  %v113_v20 = vrot.slane %v61_v57, 4 }
  0x2d   :  { %410 = vmatpush.msrb.mxu0 %v295_v32  ;;  %397 = vmatpush.msra.mxu3 %v272_v41  ;;  %v216_v21 = vadd.f32 %v169_v12, %v80_v8  ;;  %v221_v22 = vadd.f32 %v200_v13, %v112_v9  ;;  %v100_v23 = vadd.f32 %v99_v15, %v98_v2  ;;  %v170_v48 = vrot.slane %v145_v63, 4  ;;  %v138_v15 = vld [vmem:[#allocation2 + $0x24] sm:$0xf] }
  0x2e   :  { %357 = vmatpush.msra.mxu1 %v240_v59  ;;  %v157_v24 = vadd.f32 %v156_v16, %v155_v4  ;;  %v188_v26 = vadd.f32 %v187_v18, %v186_v11  ;;  %v83_v27 = vrot.slane %v82_v19, 2  ;;  %v114_v28 = vadd.f32 %v113_v20, %v61_v57  ;;  %v141_v20 = vld [vmem:[#allocation2 + $0x4c] sm:$0xf] }
  0x2f   :  { %411 = vmatpush.msrb.mxu0 %v294_v44  ;;  %v313_v56 = vsel %vm310_vm0, %v221_v22, %v216_v21  ;;  %v201_v29 = vrot.slane %v150_v0, 4  ;;  %v54_v30 = vunpack.c.h.bf16 %v575_v62  ;;  %v171_v49 = vadd.f32 %v170_v48, %v145_v63 }
  0x30   :  { %v214_v7 = vadd.f32 %v157_v24, %v68_v17  ;;  %378 = vmatmul.f32.vlgmr.msra.gmra.mxu2 %v313_v56  ;;  %v219_v32 = vadd.f32 %v188_v26, %v100_v23  ;;  %v84_v33 = vadd.f32 %v83_v27, %v82_v19  ;;  %v115_v34 = vrot.slane %v114_v28, 2 }
  0x31   :  { %412 = vmatpush.msrb.mxu0 %v293_v60  ;;  %v202_v57 = vadd.f32 %v201_v29, %v150_v0  ;;  %v59_v35 = vunpack.c.h.bf16 %v579_v3  ;;  %v69_v36 = vrot.slane %v54_v30, 4  ;;  %v143_v37 = vunpack.c.h.bf16 %v582_v5  ;;  %v49_v0 = vld [vmem:[#allocation2 + $0x10] sm:$0xf] }
  0x32   :  { %v311_v62 = vsel %vm310_vm0, %v219_v32, %v214_v7  ;;  %v85_v39 = vrot.slane %v84_v33, 1  ;;  %v116_v40 = vadd.f32 %v115_v34, %v114_v28  ;;  %v172_v41 = vrot.slane %v171_v49, 2 }
  0x33   :  { %413 = vmatpush.msrb.mxu0 %v292_v14  ;;  %v203_v42 = vrot.slane %v202_v57, 2  ;;  %v70_v54 = vadd.f32 %v69_v36, %v54_v30  ;;  %v101_v63 = vrot.slane %v59_v35, 4  ;;  %v148_v43 = vunpack.c.h.bf16 %v584_v6 }
  0x34   :  { %338 = vmatmul.f32.vlgmr.msra.gmra.mxu0 %v311_v62  ;;  %v86_v44 = vadd.f32 %v85_v39, %v84_v33  ;;  %v117_v3 = vrot.slane %v116_v40, 1  ;;  %v173_v45 = vadd.f32 %v172_v41, %v171_v49  ;;  %v158_v46 = vrot.slane %v143_v37, 4 }
  0x35   :  { %414 = vmatpush.msrb.mxu0 %v291_v25  ;;  %v204_v5 = vadd.f32 %v203_v42, %v202_v57  ;;  %v71_v47 = vrot.slane %v70_v54, 2  ;;  %v102_v50 = vadd.f32 %v101_v63, %v59_v35  ;;  %v189_v51 = vrot.slane %v148_v43, 4 }
  0x36   :  { %v118_v53 = vadd.f32 %v117_v3, %v116_v40  ;;  %v174_v58 = vrot.slane %v173_v45, 1  ;;  %v159_v59 = vadd.f32 %v158_v46, %v143_v37  ;;  %v57_v60 = vunpack.c.l.bf16 %v49_v0 }
  0x37   :  { %415 = vmatpush.msrb.mxu0 %v290_v31  ;;  %v205_v61 = vrot.slane %v204_v5, 1  ;;  %v72_v1 = vadd.f32 %v71_v47, %v70_v54  ;;  %v103_v6 = vrot.slane %v102_v50, 2  ;;  %v190_v2 = vadd.f32 %v189_v51, %v148_v43 }
  0x38   :  { %v175_v4 = vadd.f32 %v174_v58, %v173_v45  ;;  %v160_v8 = vrot.slane %v159_v59, 2  ;;  %v62_v9 = vunpack.c.l.bf16 %v52_v52  ;;  %v88_v10 = vsel %vm87_vm1, %v57_v60, 0.0  ;;  %v449_v58 = vld [vmem:[%s630_s2] ss:$0 sm:$0xff] }
  0x39   :  { %416 = vmatpush.msrb.mxu0 %v289_v38  ;;  %v206_v11 = vadd.f32 %v205_v61, %v204_v5  ;;  %v73_v12 = vrot.slane %v72_v1, 1  ;;  %v104_v13 = vadd.f32 %v103_v6, %v102_v50  ;;  %v191_v14 = vrot.slane %v190_v2, 2 }
  0x3a   :  { %v217_v16 = vadd.f32 %v175_v4, %v86_v44  ;;  %v161_v17 = vadd.f32 %v160_v8, %v159_v59  ;;  %v89_v18 = vrot.slane %v88_v10, 4  ;;  %v119_v19 = vsel %vm87_vm1, %v62_v9, 0.0 }
  0x3b   :  { %417 = vmatpush.msrb.mxu0 %v288_v55  ;;  %v222_v21 = vadd.f32 %v206_v11, %v118_v53  ;;  %v74_v22 = vadd.f32 %v73_v12, %v72_v1  ;;  %v105_v23 = vrot.slane %v104_v13, 1  ;;  %v192_v24 = vadd.f32 %v191_v14, %v190_v2 }
  0x3c   :  { %v162_v25 = vrot.slane %v161_v17, 1  ;;  %v90_v26 = vadd.f32 %v89_v18, %v88_v10  ;;  %v120_v27 = vrot.slane %v119_v19, 4  ;;  %v146_v28 = vunpack.c.l.bf16 %v138_v15 }
  0x3d   :  { %v314_v48 = vsel %vm310_vm0, %v222_v21, %v217_v16  ;;  %v106_v56 = vadd.f32 %v105_v23, %v104_v13  ;;  %v193_v7 = vrot.slane %v192_v24, 1  ;;  %v151_v29 = vunpack.c.l.bf16 %v141_v20 }
  0x3e   :  { %398 = vmatmul.f32.vlgmr.msra.gmra.mxu3 %v314_v48  ;;  %v163_v30 = vadd.f32 %v162_v25, %v161_v17  ;;  %v91_v31 = vrot.slane %v90_v26, 2  ;;  %v121_v32 = vadd.f32 %v120_v27, %v119_v19  ;;  %v176_v33 = vsel %vm87_vm1, %v146_v28, 0.0 }
  0x3f   :  { %v194_v34 = vadd.f32 %v193_v7, %v192_v24  ;;  %v177_v49 = vrot.slane %v176_v33, 4  ;;  %v207_v57 = vsel %vm87_vm1, %v151_v29, 0.0 }
  0x40   :  { %v215_v35 = vadd.f32 %v163_v30, %v74_v22  ;;  %v92_v36 = vadd.f32 %v91_v31, %v90_v26  ;;  %v122_v37 = vrot.slane %v121_v32, 2  ;;  %v208_v38 = vrot.slane %v207_v57, 4 }
  0x41   :  { %v220_v62 = vadd.f32 %v194_v34, %v106_v56  ;;  %v178_v39 = vadd.f32 %v177_v49, %v176_v33 }
  0x42   :  { %v123_v40 = vadd.f32 %v122_v37, %v121_v32  ;;  %v209_v41 = vadd.f32 %v208_v38, %v207_v57  ;;  %v93_v54 = vrot.slane %v92_v36, 1 }
  0x43   :  { %v312_v42 = vsel %vm310_vm0, %v220_v62, %v215_v35  ;;  %v179_v63 = vrot.slane %v178_v39, 2 }
  0x44   :  { %358 = vmatmul.f32.vlgmr.msra.gmra.mxu1 %v312_v42  ;;  %v124_v43 = vrot.slane %v123_v40, 1  ;;  %v210_v55 = vrot.slane %v209_v41, 2  ;;  %v94_v3 = vadd.f32 %v93_v54, %v92_v36 }
  0x45   :  { %v180_v0 = vadd.f32 %v179_v63, %v178_v39 }
  0x46   :  { %v211_v44 = vadd.f32 %v210_v55, %v209_v41  ;;  %v125_v46 = vadd.f32 %v124_v43, %v123_v40 }
  0x47   :  { %v181_v45 = vrot.slane %v180_v0, 1 }
  0x48   :  { %v212_v5 = vrot.slane %v211_v44, 1 }
  0x49   :  { %v182_v47 = vadd.f32 %v181_v45, %v180_v0 }
  0x4a   :  { %v213_v50 = vadd.f32 %v212_v5, %v211_v44 }
  0x4b   :  { %v218_v51 = vadd.f32 %v182_v47, %v94_v3 }
  0x4c   :  { %v223_v52 = vadd.f32 %v213_v50, %v125_v46 }
  0x4e   :  { %v315_v53 = vsel %vm310_vm0, %v223_v52, %v218_v51 }
  0x4f   :  { %441 = vmatmul.msk.f32.vlgmr.msrb.gmra.mxu0 %vm87_vm1, %v315_v53 }
  0xb1   :  { %v339_v59 = vpop.f32.mrf.mxu0 }
  0xb2   :  { %v340_v60 = vadd.f32 %v449_v58, %v339_v59 }
  0xb3   :  { %v379_v6 = vpop.f32.mrf.mxu2 }
  0xc1   :  { %v359_v61 = vpop.f32.mrf.mxu1  ;;  %v399_v4 = vpop.f32.mrf.mxu3 }
  0xc2   :  { %v360_v1 = vadd.f32 %v359_v61, %v340_v60 }
  0xc4   :  { %v380_v2 = vadd.f32 %v379_v6, %v360_v1 }
  0xc6   :  { %v400_v8 = vadd.f32 %v399_v4, %v380_v2 }
  0xcc   :  { %v419_v9 = vpop.f32.mrf.mxu0 }
  0xcd   :  { %v420_v10 = vadd.f32 %v419_v9, %v400_v8 }
  0xcf   :  { %422 = vst [vmem:[#allocation7] sm:$0x3] %v420_v10 }
  0xd0   :  { %433 = dma.vmem_to_hbm [thread:$0]  %s429_s27, 32, %s431_s30, [#allocation4]  }
  0xd1   :  { %526 = dma.done.wait [#allocation4], 32  }
  0xd2   :  { %527 = vsyncadd [#allocation4], 4294967264 }
  0xd3   :  { %438 = vsyncpa [#allocation3], 1 }
  0xd4   :  { %439 = vsyncpa [#allocation6], 1 }
  0xd5   :  { %440 = vsyncpa [#allocation4], 1 }

</bundles_post_ra>
